<compile_context>
chip_gen: v6e
topology: v6e:2x2x1
jax: 0.10.0
libtpu: 0.0.40
codegen_flags: <defaults>
</compile_context>

<pallas_src>
import jax
import jax.numpy as jnp
from jax.experimental import pallas as pl
from jax.experimental.pallas import tpu as pltpu


def _round_up(v, m):
    return (v + m - 1) // m * m


def _make_vpu_kernel(C, c_hidden, approximate_gelu):
    """Small-C path: weights in SMEM, channel mixes as unrolled VPU FMAs."""

    def kernel(x_ref, w1_ref, w2_ref, o_ref):
        # x_ref : (1, C, TILE_S)  VMEM, x dtype
        # w1_ref: (c_hidden, C)   SMEM, f32
        # w2_ref: (C, c_hidden)   SMEM, f32
        # o_ref : (1, C, TILE_S)  VMEM, x dtype
        x = x_ref[0]                                   # (C, TILE_S)

        # First 1x1x1 conv (channel mix) + GELU; f32 accumulation via promotion.
        h = []
        for j in range(c_hidden):
            acc = w1_ref[j, 0] * x[0:1, :]
            for c in range(1, C):
                acc = acc + w1_ref[j, c] * x[c:c + 1, :]
            h.append(jax.nn.gelu(acc, approximate=approximate_gelu))  # (1, TILE_S) f32

        # Second 1x1x1 conv + sigmoid gate, multiply with x in x.dtype.
        rows = []
        for c in range(C):
            acc = w2_ref[c, 0] * h[0]
            for j in range(1, c_hidden):
                acc = acc + w2_ref[c, j] * h[j]
            gate = jax.nn.sigmoid(acc)                                # (1, TILE_S) f32
            rows.append((gate.astype(x.dtype) * x[c:c + 1, :]).astype(o_ref.dtype))

        o_ref[0] = jnp.concatenate(rows, axis=0)       # single lane-dense tile store

    return kernel


def _make_mxu_kernel(approximate_gelu):
    """General path: left-side channel matmuls on the MXU."""

    def kernel(x_ref, w1_ref, w2_ref, o_ref):
        # x_ref : (1, C, TILE_S) VMEM, x dtype
        # w1_ref: (c_hidden, C)  VMEM, x dtype (cast hoisted to wrapper)
        # w2_ref: (C, c_hidden)  VMEM, x dtype
        x = x_ref[0]                                                     # (C, TILE_S)
        h = jnp.dot(w1_ref[...], x, preferred_element_type=jnp.float32)  # (Ch, TILE_S) f32
        h = jax.nn.gelu(h, approximate=approximate_gelu)
        a = jnp.dot(w2_ref[...], h.astype(x.dtype),
                    preferred_element_type=jnp.float32)                  # (C, TILE_S) f32
        gate = jax.nn.sigmoid(a)
        o_ref[0] = (gate.astype(x.dtype) * x).astype(o_ref.dtype)

    return kernel


def channels_attention(x_ncdhw, w1, w2, *, tile_s=None, approximate_gelu=True,
                       vmem_budget_bytes=24 * 1024 * 1024):
    """ChannelsAttention forward.

    x_ncdhw: (N, C, D, H, W); w1: (C_hidden, C); w2: (C, C_hidden)
    (PyTorch Conv3d weight convention (out, in, 1, 1, 1), squeezed, bias=False).
    """
    N, C, D, H, W = x_ncdhw.shape
    c_hidden, c_in = w1.shape
    c_out, c_hid2 = w2.shape
    assert c_in == C and c_out == C and c_hid2 == c_hidden and c_hidden >= 1, \
        "gating multiply requires out_channels == in_channels"

    S = D * H * W
    x3d = x_ncdhw.reshape(N, C, S)           # free reshape, native NCDHW layout

    dtype = x_ncdhw.dtype
    itemsize = jnp.dtype(dtype).itemsize
    sub_x = {4: 8, 2: 16, 1: 32}.get(itemsize, 8)      # sublane multiple for x dtype
    c_pad_x = _round_up(C, sub_x)                      # padded C of the x / out blocks
    c_pad_f32 = _round_up(C, 8)                        # padded C of f32 intermediates
    ch_pad_f32 = _round_up(c_hidden, 8)
    s_pad128 = _round_up(S, 128)

    if tile_s is None:
        # Per-spatial-column VMEM bytes:
        #   in block + out block, each double-buffered, in x dtype (padded C)
        #   + f32 intermediates (hidden activations + gate/attention rows).
        per_col = 4 * c_pad_x * itemsize + 4 * (ch_pad_f32 + c_pad_f32)
        tile_s = (vmem_budget_bytes // per_col) // 128 * 128
    tile_s = max(128, min(int(tile_s) // 128 * 128, s_pad128))

    # v7x megacore: if the batch axis alone can't feed both TensorCores, make
    # sure there are at least two spatial blocks.
    if N == 1 and s_pad128 >= 256 and tile_s > s_pad128 // 2:
        tile_s = max(128, _round_up(s_pad128 // 2, 128))

    grid = (N, pl.cdiv(S, tile_s))

    small = (C <= 8) and (c_hidden <= 8)
    if small:
        kernel = _make_vpu_kernel(C, c_hidden, approximate_gelu)
        w1_in = w1.astype(jnp.float32)       # tiny tables -> SMEM, f32 scalars
        w2_in = w2.astype(jnp.float32)
        w_specs = [pl.BlockSpec(memory_space=pltpu.MemorySpace.SMEM),
                   pl.BlockSpec(memory_space=pltpu.MemorySpace.SMEM)]
    else:
        kernel = _make_mxu_kernel(approximate_gelu)
        w1_in = w1.astype(dtype)             # cast hoisted out of the kernel
        w2_in = w2.astype(dtype)
        w_specs = [pl.BlockSpec((c_hidden, C), lambda n, s: (0, 0)),
                   pl.BlockSpec((C, c_hidden), lambda n, s: (0, 0))]

    vmem_limit = int(min(max(32 * 1024 * 1024, vmem_budget_bytes + 8 * 1024 * 1024),
                         48 * 1024 * 1024))

    out3d = pl.pallas_call(
        kernel,
        out_shape=jax.ShapeDtypeStruct((N, C, S), dtype),
        grid_spec=pltpu.PrefetchScalarGridSpec(
            num_scalar_prefetch=0,
            grid=grid,
            in_specs=[pl.BlockSpec((1, C, tile_s), lambda n, s: (n, 0, s))] + w_specs,
            out_specs=pl.BlockSpec((1, C, tile_s), lambda n, s: (n, 0, s)),
        ),
        compiler_params=pltpu.CompilerParams(
            dimension_semantics=("parallel", "parallel"),
            vmem_limit_bytes=vmem_limit),
    )(x3d, w1_in, w2_in)

    return out3d.reshape(N, C, D, H, W)


def channels_attention_ref(x_ncdhw, w1, w2, *, approximate_gelu=True):
    """Pure-JAX reference mirroring the PyTorch module (f32 compute)."""
    xf = x_ncdhw.astype(jnp.float32)
    h = jnp.einsum('ncdhw,oc->nodhw', xf, w1.astype(jnp.float32))
    h = jax.nn.gelu(h, approximate=approximate_gelu)
    a = jnp.einsum('ncdhw,oc->nodhw', h, w2.astype(jnp.float32))
    a = jax.nn.sigmoid(a)
    return (a * xf).astype(x_ncdhw.dtype)


if __name__ == "__main__":
    key = jax.random.PRNGKey(0)
    k_x, k_w1, k_w2 = jax.random.split(key, 3)

    # Small shapes consistent with the module: in_channels=4, ratio=2,
    # out_channels=4 (== in_channels), 3-D spatial volume 4x8x9 (S=288 is NOT a
    # multiple of 128, so the boundary-block masking path is exercised), batch 2.
    N, C, D, H, W = 2, 4, 4, 8, 9
    ratio = 2
    C_hidden = C // ratio

    x = jax.random.normal(k_x, (N, C, D, H, W), dtype=jnp.float32)
    # deterministic synthetic Conv3d weights (bias=False, kernel 1x1x1)
    w1 = jax.random.normal(k_w1, (C_hidden, C), dtype=jnp.float32) * (1.0 / C ** 0.5)
    w2 = jax.random.normal(k_w2, (C, C_hidden), dtype=jnp.float32) * (1.0 / C_hidden ** 0.5)

    # 1) Default (auto tile_s -> single masked spatial block per batch element).
    out = jax.block_until_ready(channels_attention(x, w1, w2))
    ref_approx = channels_attention_ref(x, w1, w2, approximate_gelu=True)
    ref_exact = channels_attention_ref(x, w1, w2, approximate_gelu=False)
    assert out.shape == x.shape
    assert jnp.allclose(out, ref_approx, atol=1e-4, rtol=1e-4), \
        "mismatch vs matching-GELU JAX reference"
    assert jnp.allclose(out, ref_exact, atol=1e-2, rtol=1e-2), \
        "deviates too far from exact-erf (PyTorch) semantics"

    # 2) Explicit small tiles -> multiple grid steps + masked boundary block.
    out_tiled = jax.block_until_ready(channels_attention(x, w1, w2, tile_s=128))
    assert jnp.allclose(out_tiled, ref_approx, atol=1e-4, rtol=1e-4), \
        "mismatch with tile_s=128 (boundary masking path)"

    print("KERNEL_OK")
</pallas_src>

<mosaic_0001>
module attributes {stable_mosaic.version = 11 : i64} {
  func.func @kernel(%arg0: i32, %arg1: i32, %arg2: memref<1x4x384xf32, #tpu.memory_space<vmem>>, %arg3: memref<2x4xf32, #tpu.memory_space<smem>>, %arg4: memref<4x2xf32, #tpu.memory_space<smem>>, %arg5: memref<1x4x384xf32, #tpu.memory_space<vmem>>) attributes {dimension_semantics = [#tpu.dimension_semantics<parallel>, #tpu.dimension_semantics<parallel>], iteration_bounds = array<i64: 2, 1>, scalar_prefetch = 0 : i64, scratch_operands = 0 : i64, tpu.core_type = #tpu.core_type<tc>, window_params = [{transform_indices = @transform_0, window_bounds = array<i64: 1, 4, 384>}, {transform_indices = @transform_1, window_bounds = array<i64: 2, 4>}, {transform_indices = @transform_2, window_bounds = array<i64: 4, 2>}, {transform_indices = @transform_3, window_bounds = array<i64: 1, 4, 384>}]} {
    %c0 = arith.constant 0 : index
    %c0_0 = arith.constant 0 : index
    %c0_1 = arith.constant 0 : index
    %0 = vector.load %arg2[%c0, %c0_0, %c0_1] : memref<1x4x384xf32, #tpu.memory_space<vmem>>, vector<1x4x384xf32>
    %1 = vector.shape_cast %0 : vector<1x4x384xf32> to vector<4x384xf32>
    %c0_2 = arith.constant 0 : index
    %c0_3 = arith.constant 0 : index
    %2 = memref.load %arg3[%c0_2, %c0_3] : memref<2x4xf32, #tpu.memory_space<smem>>
    %3 = vector.extract_strided_slice %1 {offsets = [0, 0], sizes = [1, 384], strides = [1, 1]} : vector<4x384xf32> to vector<1x384xf32>
    %4 = vector.broadcast %2 : f32 to vector<1x384xf32>
    %5 = arith.mulf %4, %3 : vector<1x384xf32>
    %c0_4 = arith.constant 0 : index
    %c1 = arith.constant 1 : index
    %6 = memref.load %arg3[%c0_4, %c1] : memref<2x4xf32, #tpu.memory_space<smem>>
    %7 = vector.extract_strided_slice %1 {offsets = [1, 0], sizes = [1, 384], strides = [1, 1]} : vector<4x384xf32> to vector<1x384xf32>
    %8 = vector.broadcast %6 : f32 to vector<1x384xf32>
    %9 = arith.mulf %8, %7 : vector<1x384xf32>
    %10 = arith.addf %5, %9 : vector<1x384xf32>
    %c0_5 = arith.constant 0 : index
    %c2 = arith.constant 2 : index
    %11 = memref.load %arg3[%c0_5, %c2] : memref<2x4xf32, #tpu.memory_space<smem>>
    %12 = vector.extract_strided_slice %1 {offsets = [2, 0], sizes = [1, 384], strides = [1, 1]} : vector<4x384xf32> to vector<1x384xf32>
    %13 = vector.broadcast %11 : f32 to vector<1x384xf32>
    %14 = arith.mulf %13, %12 : vector<1x384xf32>
    %15 = arith.addf %10, %14 : vector<1x384xf32>
    %c0_6 = arith.constant 0 : index
    %c3 = arith.constant 3 : index
    %16 = memref.load %arg3[%c0_6, %c3] : memref<2x4xf32, #tpu.memory_space<smem>>
    %17 = vector.extract_strided_slice %1 {offsets = [3, 0], sizes = [1, 384], strides = [1, 1]} : vector<4x384xf32> to vector<1x384xf32>
    %18 = vector.broadcast %16 : f32 to vector<1x384xf32>
    %19 = arith.mulf %18, %17 : vector<1x384xf32>
    %20 = arith.addf %15, %19 : vector<1x384xf32>
    %21 = arith.mulf %20, %20 : vector<1x384xf32>
    %22 = arith.mulf %20, %21 : vector<1x384xf32>
    %cst = arith.constant 4.471500e-02 : f32
    %23 = vector.broadcast %cst : f32 to vector<1x384xf32>
    %24 = arith.mulf %23, %22 : vector<1x384xf32>
    %25 = arith.addf %20, %24 : vector<1x384xf32>
    %cst_7 = arith.constant 0.797884583 : f32
    %26 = vector.broadcast %cst_7 : f32 to vector<1x384xf32>
    %27 = arith.mulf %26, %25 : vector<1x384xf32>
    %28 = math.tanh %27 : vector<1x384xf32>
    %cst_8 = arith.constant 1.000000e+00 : f32
    %29 = vector.broadcast %cst_8 : f32 to vector<1x384xf32>
    %30 = arith.addf %29, %28 : vector<1x384xf32>
    %cst_9 = arith.constant 5.000000e-01 : f32
    %31 = vector.broadcast %cst_9 : f32 to vector<1x384xf32>
    %32 = arith.mulf %31, %30 : vector<1x384xf32>
    %33 = arith.mulf %20, %32 : vector<1x384xf32>
    %c1_10 = arith.constant 1 : index
    %c0_11 = arith.constant 0 : index
    %34 = memref.load %arg3[%c1_10, %c0_11] : memref<2x4xf32, #tpu.memory_space<smem>>
    %35 = vector.extract_strided_slice %1 {offsets = [0, 0], sizes = [1, 384], strides = [1, 1]} : vector<4x384xf32> to vector<1x384xf32>
    %36 = vector.broadcast %34 : f32 to vector<1x384xf32>
    %37 = arith.mulf %36, %35 : vector<1x384xf32>
    %c1_12 = arith.constant 1 : index
    %c1_13 = arith.constant 1 : index
    %38 = memref.load %arg3[%c1_12, %c1_13] : memref<2x4xf32, #tpu.memory_space<smem>>
    %39 = vector.extract_strided_slice %1 {offsets = [1, 0], sizes = [1, 384], strides = [1, 1]} : vector<4x384xf32> to vector<1x384xf32>
    %40 = vector.broadcast %38 : f32 to vector<1x384xf32>
    %41 = arith.mulf %40, %39 : vector<1x384xf32>
    %42 = arith.addf %37, %41 : vector<1x384xf32>
    %c1_14 = arith.constant 1 : index
    %c2_15 = arith.constant 2 : index
    %43 = memref.load %arg3[%c1_14, %c2_15] : memref<2x4xf32, #tpu.memory_space<smem>>
    %44 = vector.extract_strided_slice %1 {offsets = [2, 0], sizes = [1, 384], strides = [1, 1]} : vector<4x384xf32> to vector<1x384xf32>
    %45 = vector.broadcast %43 : f32 to vector<1x384xf32>
    %46 = arith.mulf %45, %44 : vector<1x384xf32>
    %47 = arith.addf %42, %46 : vector<1x384xf32>
    %c1_16 = arith.constant 1 : index
    %c3_17 = arith.constant 3 : index
    %48 = memref.load %arg3[%c1_16, %c3_17] : memref<2x4xf32, #tpu.memory_space<smem>>
    %49 = vector.extract_strided_slice %1 {offsets = [3, 0], sizes = [1, 384], strides = [1, 1]} : vector<4x384xf32> to vector<1x384xf32>
    %50 = vector.broadcast %48 : f32 to vector<1x384xf32>
    %51 = arith.mulf %50, %49 : vector<1x384xf32>
    %52 = arith.addf %47, %51 : vector<1x384xf32>
    %53 = arith.mulf %52, %52 : vector<1x384xf32>
    %54 = arith.mulf %52, %53 : vector<1x384xf32>
    %cst_18 = arith.constant 4.471500e-02 : f32
    %55 = vector.broadcast %cst_18 : f32 to vector<1x384xf32>
    %56 = arith.mulf %55, %54 : vector<1x384xf32>
    %57 = arith.addf %52, %56 : vector<1x384xf32>
    %cst_19 = arith.constant 0.797884583 : f32
    %58 = vector.broadcast %cst_19 : f32 to vector<1x384xf32>
    %59 = arith.mulf %58, %57 : vector<1x384xf32>
    %60 = math.tanh %59 : vector<1x384xf32>
    %cst_20 = arith.constant 1.000000e+00 : f32
    %61 = vector.broadcast %cst_20 : f32 to vector<1x384xf32>
    %62 = arith.addf %61, %60 : vector<1x384xf32>
    %cst_21 = arith.constant 5.000000e-01 : f32
    %63 = vector.broadcast %cst_21 : f32 to vector<1x384xf32>
    %64 = arith.mulf %63, %62 : vector<1x384xf32>
    %65 = arith.mulf %52, %64 : vector<1x384xf32>
    %c0_22 = arith.constant 0 : index
    %c0_23 = arith.constant 0 : index
    %66 = memref.load %arg4[%c0_22, %c0_23] : memref<4x2xf32, #tpu.memory_space<smem>>
    %67 = vector.broadcast %66 : f32 to vector<1x384xf32>
    %68 = arith.mulf %67, %33 : vector<1x384xf32>
    %c0_24 = arith.constant 0 : index
    %c1_25 = arith.constant 1 : index
    %69 = memref.load %arg4[%c0_24, %c1_25] : memref<4x2xf32, #tpu.memory_space<smem>>
    %70 = vector.broadcast %69 : f32 to vector<1x384xf32>
    %71 = arith.mulf %70, %65 : vector<1x384xf32>
    %72 = arith.addf %68, %71 : vector<1x384xf32>
    %73 = arith.negf %72 : vector<1x384xf32>
    %74 = math.exp %73 : vector<1x384xf32>
    %cst_26 = arith.constant 1.000000e+00 : f32
    %75 = vector.broadcast %cst_26 : f32 to vector<1x384xf32>
    %76 = arith.addf %75, %74 : vector<1x384xf32>
    %77 = arith.divf %75, %76 : vector<1x384xf32>
    %78 = vector.extract_strided_slice %1 {offsets = [0, 0], sizes = [1, 384], strides = [1, 1]} : vector<4x384xf32> to vector<1x384xf32>
    %79 = arith.mulf %77, %78 : vector<1x384xf32>
    %c1_27 = arith.constant 1 : index
    %c0_28 = arith.constant 0 : index
    %80 = memref.load %arg4[%c1_27, %c0_28] : memref<4x2xf32, #tpu.memory_space<smem>>
    %81 = vector.broadcast %80 : f32 to vector<1x384xf32>
    %82 = arith.mulf %81, %33 : vector<1x384xf32>
    %c1_29 = arith.constant 1 : index
    %c1_30 = arith.constant 1 : index
    %83 = memref.load %arg4[%c1_29, %c1_30] : memref<4x2xf32, #tpu.memory_space<smem>>
    %84 = vector.broadcast %83 : f32 to vector<1x384xf32>
    %85 = arith.mulf %84, %65 : vector<1x384xf32>
    %86 = arith.addf %82, %85 : vector<1x384xf32>
    %87 = arith.negf %86 : vector<1x384xf32>
    %88 = math.exp %87 : vector<1x384xf32>
    %cst_31 = arith.constant 1.000000e+00 : f32
    %89 = vector.broadcast %cst_31 : f32 to vector<1x384xf32>
    %90 = arith.addf %89, %88 : vector<1x384xf32>
    %91 = arith.divf %89, %90 : vector<1x384xf32>
    %92 = vector.extract_strided_slice %1 {offsets = [1, 0], sizes = [1, 384], strides = [1, 1]} : vector<4x384xf32> to vector<1x384xf32>
    %93 = arith.mulf %91, %92 : vector<1x384xf32>
    %c2_32 = arith.constant 2 : index
    %c0_33 = arith.constant 0 : index
    %94 = memref.load %arg4[%c2_32, %c0_33] : memref<4x2xf32, #tpu.memory_space<smem>>
    %95 = vector.broadcast %94 : f32 to vector<1x384xf32>
    %96 = arith.mulf %95, %33 : vector<1x384xf32>
    %c2_34 = arith.constant 2 : index
    %c1_35 = arith.constant 1 : index
    %97 = memref.load %arg4[%c2_34, %c1_35] : memref<4x2xf32, #tpu.memory_space<smem>>
    %98 = vector.broadcast %97 : f32 to vector<1x384xf32>
    %99 = arith.mulf %98, %65 : vector<1x384xf32>
    %100 = arith.addf %96, %99 : vector<1x384xf32>
    %101 = arith.negf %100 : vector<1x384xf32>
    %102 = math.exp %101 : vector<1x384xf32>
    %cst_36 = arith.constant 1.000000e+00 : f32
    %103 = vector.broadcast %cst_36 : f32 to vector<1x384xf32>
    %104 = arith.addf %103, %102 : vector<1x384xf32>
    %105 = arith.divf %103, %104 : vector<1x384xf32>
    %106 = vector.extract_strided_slice %1 {offsets = [2, 0], sizes = [1, 384], strides = [1, 1]} : vector<4x384xf32> to vector<1x384xf32>
    %107 = arith.mulf %105, %106 : vector<1x384xf32>
    %c3_37 = arith.constant 3 : index
    %c0_38 = arith.constant 0 : index
    %108 = memref.load %arg4[%c3_37, %c0_38] : memref<4x2xf32, #tpu.memory_space<smem>>
    %109 = vector.broadcast %108 : f32 to vector<1x384xf32>
    %110 = arith.mulf %109, %33 : vector<1x384xf32>
    %c3_39 = arith.constant 3 : index
    %c1_40 = arith.constant 1 : index
    %111 = memref.load %arg4[%c3_39, %c1_40] : memref<4x2xf32, #tpu.memory_space<smem>>
    %112 = vector.broadcast %111 : f32 to vector<1x384xf32>
    %113 = arith.mulf %112, %65 : vector<1x384xf32>
    %114 = arith.addf %110, %113 : vector<1x384xf32>
    %115 = arith.negf %114 : vector<1x384xf32>
    %116 = math.exp %115 : vector<1x384xf32>
    %cst_41 = arith.constant 1.000000e+00 : f32
    %117 = vector.broadcast %cst_41 : f32 to vector<1x384xf32>
    %118 = arith.addf %117, %116 : vector<1x384xf32>
    %119 = arith.divf %117, %118 : vector<1x384xf32>
    %120 = vector.extract_strided_slice %1 {offsets = [3, 0], sizes = [1, 384], strides = [1, 1]} : vector<4x384xf32> to vector<1x384xf32>
    %121 = arith.mulf %119, %120 : vector<1x384xf32>
    %122 = tpu.concatenate %79, %93, %107, %121 in 0 : vector<1x384xf32>, vector<1x384xf32>, vector<1x384xf32>, vector<1x384xf32> -> vector<4x384xf32>
    %c0_42 = arith.constant 0 : index
    %c0_43 = arith.constant 0 : index
    %c0_44 = arith.constant 0 : index
    %123 = vector.load %arg5[%c0_42, %c0_43, %c0_44] : memref<1x4x384xf32, #tpu.memory_space<vmem>>, vector<1x4x384xf32>
    %124 = vector.shape_cast %123 : vector<1x4x384xf32> to vector<4x384xf32>
    %125 = vector.shape_cast %122 : vector<4x384xf32> to vector<1x4x384xf32>
    tpu.vector_store %arg5[%c0_42, %c0_43, %c0_44], %125 {strides = array<i32>} : memref<1x4x384xf32, #tpu.memory_space<vmem>>, vector<1x4x384xf32>,
    return
  }
  func.func @transform_0(%arg0: i32, %arg1: i32) -> (i32, i32, i32) {
    %c0_i32 = arith.constant 0 : i32
    %c0_i32_0 = arith.constant 0 : i32
    return %arg0, %c0_i32, %arg1 : i32, i32, i32
  }
  func.func @transform_1(%arg0: i32, %arg1: i32) -> (i32, i32) {
    %c0_i32 = arith.constant 0 : i32
    %c0_i32_0 = arith.constant 0 : i32
    %c0_i32_1 = arith.constant 0 : i32
    return %c0_i32, %c0_i32_0 : i32, i32
  }
  func.func @transform_2(%arg0: i32, %arg1: i32) -> (i32, i32) {
    %c0_i32 = arith.constant 0 : i32
    %c0_i32_0 = arith.constant 0 : i32
    %c0_i32_1 = arith.constant 0 : i32
    return %c0_i32, %c0_i32_0 : i32, i32
  }
  func.func @transform_3(%arg0: i32, %arg1: i32) -> (i32, i32, i32) {
    %c0_i32 = arith.constant 0 : i32
    %c0_i32_0 = arith.constant 0 : i32
    return %arg0, %c0_i32, %arg1 : i32, i32, i32
  }
}

</mosaic_0001>

<bundles_post_ra>
// kernel: tpu_custom_call.1
= control target key start
LH: loop header
LB: loop body
LE: loop exit
PB: predicated region body
PF: predicated region fallthrough
CT: control target
= control target key end

     0   :  { %8 = vsyncpa [#allocation3], 0  ;;  %s1288_s0 = inlined_call_operand.hbm [shape: f32[2,4,288], index: 0, kind: input, shape index: {}]   ;;  %s1289_s1 = inlined_call_operand.vmem [shape: f32[2,4], index: 1, kind: input, shape index: {}]   ;;  %s1290_s2 = inlined_call_operand.vmem [shape: f32[4,2], index: 2, kind: input, shape index: {}]   ;;  %s1291_s3 = inlined_call_operand.hbm [shape: f32[2,4,288], index: 3, kind: output, shape index: {}]  }
   0x1   :  { %10 = vsyncpa [#allocation3 + $0x1], 0 }
   0x2   :  { %11 = vsyncpa [#allocation5], 0 }
   0x3   :  { %12 = vsyncpa [#allocation8], 0 }
   0x4   :  { %13 = vsyncpa [#allocation4], 0 }
   0x5   :  { %15 = vsyncpa [#allocation4 + $0x1], 0  ;;  %s1041_s12 = smov 0   ;;  %s1043_s13 = smov 0  }
   0x6   :  { %s1045_s14 = smov 0   ;;  %s1047_s15 = smov 0  }
   0x7   :  { %s1049_s16 = smov 0   ;;  %s1051_s17 = smov 0  }
   0x8 LB: > { %s689_s18 = sadd.s32 4294967295, %s1015_s17   ;;  %s690_s19 = sadd.s32 4294967294, %s1015_s17   ;;  %s1015_s17 = sphi %s1051_s17, %s21_s17   ;;  %s1011_s16 = sphi %s1049_s16, %s1314_s16   ;;  %s1007_s15 = sphi %s1047_s15, %s1313_s15   ;;  %s1003_s14 = sphi %s1045_s14, %s1312_s14   ;;  %s999_s13 = sphi %s1043_s13, %s1311_s13   ;;  %s995_s12 = sphi %s1041_s12, %s1310_s12  }
   0x9   : > { %p55_p0 = scmp.ne.s32.totalorder %s999_s13, %s995_s12  ;;  %p1075_p1 = scmp.eq.s32.totalorder %s689_s18, 0 }
   0xa   : > { %p1079_p2 = scmp.eq.s32.totalorder %s689_s18, 1  ;;  %p129_p3 = scmp.eq.s32.totalorder %s690_s19, 1 }
   0xb   : > { %s1296_s20 = scalar_select %p1075_p1, 1, 0 }
   0xc   : > { %s1297_s21 = scalar_select %p1079_p2, 1, 0 }
   0xd   : > { %p1085_p4 = por %p1075_p1, %p55_p0  ;;  %p691_p5 = scmp.ge.s32.totalorder %s1015_s17, 1 }
   0xe   : > { %p1090_p6 = por %p129_p3, %p55_p0  ;;  %p136_p7 = scmp.lt.s32.totalorder %s1015_s17, 3 }
   0xf   : > { %s1298_s22 = scalar_select %p1085_p4, 1, 0 }
  0x10   : > { %s1299_s23 = scalar_select %p1090_p6, 1, 0 }
  0x11   : > { %s149_s26 = sshll.u32 %s1289_s1, 4  ;;  %p1098_p8 = pnand %p691_p5, %p136_p7  ;;  %s150_s26 = int_to_ptr.vmem [resolvable:$true] %s149_s26 }
  0x12   : > { %s160_s30 = sshll.u32 %s1290_s2, 4  ;;  %s869_s5 = scalar_lea.vmem %s150_s26, 32  ;;  %s161_s30 = int_to_ptr.vmem [resolvable:$true] %s160_s30 }
  0x13   : > { %s1300_s27 = scalar_select %p1098_p8, 1, 0 }
  0x14   : > { %p758_p10 = pneg %p1098_p8  ;;  %p870_p12 = scmp.ne.s32.totalorder %s150_s26, %s869_s5 }
  0x15   : > { %p877_p5 = scmp.lt.s32.totalorder %s150_s26, %s150_s26  ;;  %p878_p7 = scmp.lt.s32.totalorder %s869_s5, %s869_s5 }
  0x16   : > { %p1110_p11 = pnand %p758_p10, %p1075_p1 }
  0x17   : > { %p879_p9 = por %p878_p7, %p877_p5 }
  0x18   : > { %p871_p13 = pneg %p1110_p11 }
  0x1a   : > { %p872_p0 = pnand %p871_p13, %p870_p12 }
  0x1c   : > { %p873_p3 = pneg %p872_p0 }
  0x1e   : > { %p880_p6 = pnand %p879_p9, %p873_p3 }
  0x20   : > { %883 = shalt.err (!%p880_p6)
}
  0x21   : > { %s1017_s6 = smov [#allocation6]   ;;  %s884_s7 = scalar_lea.vmem %s161_s30, 64 }
  0x22   : > { %761 = dma.vmem_to_smem (!%p1110_p11), %s150_s26, 32, %s1017_s6, [#allocation5]  }
  0x23   : > { %p885_p10 = scmp.ne.s32.totalorder %s161_s30, %s884_s7  ;;  %p892_p8 = scmp.lt.s32.totalorder %s161_s30, %s161_s30 }
  0x24   : > { %p893_p2 = scmp.lt.s32.totalorder %s884_s7, %s884_s7 }
  0x25   : > { %p887_p1 = pnand %p885_p10, %p871_p13 }
  0x26   : > { %p894_p12 = por %p893_p2, %p892_p8 }
  0x27   : > { %p888_p4 = pneg %p887_p1 }
  0x29   : > { %p895_p0 = pnand %p894_p12, %p888_p4 }
  0x2b   : > { %898 = shalt.err (!%p895_p0)
}
  0x2c   : > { %s1018_s8 = smov [#allocation7]   ;;  %s33_s9 = sadd.s32 1, %s1011_s16 }
  0x2d   : > { %764 = dma.vmem_to_smem (!%p1110_p11), %s161_s30, 64, %s1018_s8, [#allocation8]  }
  0x2e   : > { %s42_s10 = sadd.s32 1, %s1003_s14  ;;  %p35_p1 = scmp.ge.s32.totalorder %s33_s9, 2 }
  0x2f   : > { %p49_p2 = scmp.ne.s32.totalorder %s1003_s14, %s999_s13  ;;  %p50_p4 = scmp.eq.s32.totalorder %s1015_s17, 0 }
  0x30   : > { %p775_p6 = scmp.lt.s32.totalorder %s1015_s17, 2  ;;  %s1316_s9 = smov (%p35_p1, %s33_s9), 0 }
  0x31   : > { %p51_p8 = por %p50_p4, %p49_p2  ;;  %p1302_p9 = scmp.ne.s32.totalorder %s1297_s21, 0 }
  0x32   : > { %s37_s18 = ssub.s32 %s1011_s16, %s1316_s9  ;;  %s171_s19 = sand.u32 1, %s1003_s14  }
  0x33   : > { %p1130_p13 = por %p1302_p9, %p49_p2  ;;  %p40_p3 = scmp.eq.s32.totalorder %s37_s18, 0 }
  0x34   : > { %s742_s24 = smul.u32 12, %s171_s19  ;;  %p1137_p11 = pnand %p775_p6, %p51_p8 }
  0x35   : > { %s1142_s26 = scalar_select %p40_p3, %s1003_s14, %s42_s10  }
  0x36   : > { %s743_s28 = smul.u32 192, %s1011_s16  ;;  %s175_s29 = scalar_lea.vmem [#allocation2], %s742_s24 }
  0x37   : > { %s185_s30 = sshll.u32 %s175_s29, 4  ;;  %s172_s6 = scalar_lea.sflag [#allocation3], %s171_s19  ;;  %s186_s30 = int_to_ptr.vmem [resolvable:$true] %s185_s30 }
  0x38   : > { %s183_s5 = scalar_lea.hbm %s1288_s0, %s743_s28  ;;  %p901_p5 = pneg %p1137_p11 }
  0x39   : > { %s912_s7 = scalar_lea.vmem %s186_s30, 192  ;;  %s1019_s8 = smov [#allocation2]  }
  0x3a   : > { %p913_p7 = scmp.ne.s32.totalorder %s186_s30, %s912_s7  ;;  %s917_s18 = sshll.u32 %s1019_s8, 4  ;;  %s918_s18 = int_to_ptr.vmem [resolvable:$false] %s917_s18 }
  0x3b   : > { %s919_s10 = scalar_lea.vmem %s918_s18, 384  ;;  %p920_p0 = scmp.lt.s32.totalorder %s186_s30, %s918_s18 }
  0x3c   : > { %p915_p10 = pnand %p913_p7, %p901_p5  ;;  %p921_p1 = scmp.lt.s32.totalorder %s919_s10, %s912_s7 }
  0x3e   : > { %p916_p12 = pneg %p915_p10  ;;  %p922_p2 = por %p921_p1, %p920_p0 }
  0x40   : > { %p923_p4 = pnand %p922_p2, %p916_p12 }
  0x42   : > { %926 = shalt.err (!%p923_p4)
}
  0x43   : > { %768 = dma.hbm_to_vmem [thread:$0]  (!%p1137_p11), %s183_s5, 192, %s186_s30, %s172_s6  }
  0x44   : > { %p1305_p6 = scmp.ne.s32.totalorder %s1300_s27, 0 }
  0x45   : > { %s1155_s19 = sand.u32 (!%p1305_p6), 1, %s999_s13   ;;  %p1306_p8 = scmp.ne.s32.totalorder (!%p1305_p6), %s1298_s22, 0 }
  0x46   : > { %194 = sbr.rel (%p1305_p6) target bundleno = 198 (0xc6), region = 32  ;;  %s197_s28 = scalar_lea.sflag (!%p1305_p6), [#allocation3], %s1155_s19 }
  0x47   : > { %s744_s24 = smul.u32 (!%p1305_p6), 12, %s1155_s19 }
  0x49   : > { %s200_s29 = scalar_lea.vmem (!%p1305_p6), [#allocation2], %s744_s24 }
  0x4b   : > { %978 = dma.done.wait (%p1306_p8), %s197_s28, 192  }
  0x4c   : > { %980 = vsyncadd (%p1306_p8), %s197_s28, 4294967104  ;;  %p1307_p9 = scmp.ne.s32.totalorder %s1296_s20, 0 }
  0x4e   : > { %982 = dma.done.wait (%p1307_p9), [#allocation5], 32  }
  0x4f   : > { %984 = vsyncadd (%p1307_p9), [#allocation5], 4294967264 }
  0x50   : > { %986 = dma.done.wait (%p1307_p9), [#allocation8], 64  }
  0x51   : > { %988 = vsyncadd (%p1307_p9), [#allocation8], 4294967232 }
  0x52   : > { %213 = sfence }
  0x53   : > { %s236_s27 = sld [smem:[#allocation6]]  ;;  %v1173_v0 = vld [vmem:[%s200_s29] sm:$0xff]  ;;  %v1175_v1 = vld [vmem:[%s200_s29 + $0x8] sm:$0xf]  ;;  %vm548_vm0 = vcmask 1040384   ;;  %vm552_vm1 = vcmask 1041408  }
  0x54   : > { %s699_s25 = sld [smem:[#allocation6 + $0x1]]  ;;  %vm556_vm2 = vcmask 1042432  }
  0x55   : > { %s702_s30 = sld [smem:[#allocation6 + $0x2]] }
  0x56   : > { %s705_s4 = sld [smem:[#allocation6 + $0x3]] }
  0x57   : > { %s708_s21 = sld [smem:[#allocation6 + $0x80]] }
  0x58   : > { %s709_s22 = sld [smem:[#allocation6 + $0x81]] }
  0x59   : > { %v237_v2 = vstv %s236_s27  ;;  %s1177_s5 = sld [smem:[#allocation6 + $0x82]] }
  0x5a   : > { %v238_v3 = vmul.f32 %v237_v2, %v1173_v0  ;;  %v241_v4 = vstv %s699_s25  ;;  %s1180_s6 = sld [smem:[#allocation6 + $0x83]]  ;;  %v239_v5 = vmul.f32 %v237_v2, %v1175_v1  ;;  %s745_s25 = smul.u32 192, %s1007_s15 }
  0x5b   : > { %v242_v6 = vmul.f32 %v241_v4, %v1173_v0  ;;  %v243_v7 = vmul.f32 %v241_v4, %v1175_v1  ;;  %v255_v8 = vstv %s702_s30  ;;  %s1199_s20 = sld [smem:[#allocation7]]  ;;  %s231_s30 = scalar_lea.vmem [#allocation9], %s744_s24 }
  0x5c   : > { %v256_v9 = vmul.f32 %v255_v8, %v1173_v0  ;;  %v257_v10 = vmul.f32 %v255_v8, %v1175_v1  ;;  %v269_v11 = vstv %s705_s4  ;;  %s1201_s7 = sld [smem:[#allocation7 + $0x1]]  ;;  %s583_s4 = sshll.u32 %s231_s30, 4  ;;  %s584_s4 = int_to_ptr.vmem [resolvable:$true] %s583_s4 }
  0x5d   : > { %v700_v12 = vrot.slane %v242_v6, 9  ;;  %v701_v13 = vrot.slane %v243_v7, 9  ;;  %v270_v14 = vmul.f32 %v269_v11, %v1173_v0  ;;  %v271_v15 = vmul.f32 %v269_v11, %v1175_v1  ;;  %s1203_s8 = sld [smem:[#allocation7 + $0x80]]  ;;  %s567_s24 = scalar_lea.sflag [#allocation4], %s1155_s19 }
  0x5e   : > { %v703_v16 = vrot.slane %v256_v9, 10  ;;  %v704_v17 = vrot.slane %v257_v10, 10  ;;  %v301_v18 = vstv %s708_s21  ;;  %v305_v19 = vstv %s709_s22  ;;  %s1205_s18 = sld [smem:[#allocation7 + $0x81]]  ;;  %s1246_s22 = scalar_lea.hbm %s1291_s3, %s745_s25 }
  0x5f   : > { %v252_v20 = vadd.f32 %v700_v12, %v238_v3  ;;  %v253_v21 = vadd.f32 %v701_v13, %v239_v5  ;;  %v706_v22 = vrot.slane %v270_v14, 11  ;;  %v707_v23 = vrot.slane %v271_v15, 11  ;;  %s1207_s10 = sld [smem:[#allocation7 + $0x100]] }
  0x60   : > { %v302_v24 = vmul.f32 %v301_v18, %v1173_v0  ;;  %v303_v25 = vmul.f32 %v301_v18, %v1175_v1  ;;  %v306_v26 = vmul.f32 %v305_v19, %v1173_v0  ;;  %v307_v27 = vmul.f32 %v305_v19, %v1175_v1  ;;  %s1209_s28 = sld [smem:[#allocation7 + $0x101]] }
  0x61   : > { %v266_v28 = vadd.f32 %v703_v16, %v252_v20  ;;  %v267_v29 = vadd.f32 %v704_v17, %v253_v21  ;;  %v319_v30 = vstv %s1177_s5  ;;  %v333_v31 = vstv %s1180_s6  ;;  %s1211_s29 = sld [smem:[#allocation7 + $0x180]]  ;;  %s927_s5 = scalar_lea.vmem %s584_s4, 192 }
  0x62   : > { %v710_v32 = vrot.slane %v306_v26, 9  ;;  %v711_v33 = vrot.slane %v307_v27, 9  ;;  %v320_v34 = vmul.f32 %v319_v30, %v1173_v0  ;;  %v321_v35 = vmul.f32 %v319_v30, %v1175_v1  ;;  %s1213_s27 = sld [smem:[#allocation7 + $0x181]]  ;;  %p928_p3 = scmp.ne.s32.totalorder %s584_s4, %s927_s5 }
  0x63   : > { %v280_v36 = vadd.f32 %v706_v22, %v266_v28  ;;  %v281_v37 = vadd.f32 %v707_v23, %v267_v29  ;;  %v334_v38 = vmul.f32 %v333_v31, %v1173_v0  ;;  %v335_v39 = vmul.f32 %v333_v31, %v1175_v1  ;;  %s1020_s6 = smov [#allocation9]  }
  0x64   : > { %v316_v40 = vadd.f32 %v710_v32, %v302_v24  ;;  %v317_v41 = vadd.f32 %v711_v33, %v303_v25  ;;  %v713_v42 = vrot.slane %v320_v34, 10  ;;  %v714_v43 = vrot.slane %v321_v35, 10  ;;  %p929_p11 = pnand %p928_p3, %p1130_p13 }
  0x65   : > { %v282_v44 = vmul.f32 %v280_v36, %v280_v36  ;;  %v283_v45 = vmul.f32 %v281_v37, %v281_v37  ;;  %v716_v46 = vrot.slane %v334_v38, 11  ;;  %v717_v47 = vrot.slane %v335_v39, 11 }
  0x66   : > { %v330_v48 = vadd.f32 %v713_v42, %v316_v40  ;;  %v331_v49 = vadd.f32 %v714_v43, %v317_v41  ;;  %v365_v19 = vstv %s1199_s20  ;;  %v389_v20 = vstv %s1203_s8  ;;  %p930_p5 = pneg %p929_p11  ;;  %s931_s20 = sshll.u32 %s1020_s6, 4  ;;  %s932_s20 = int_to_ptr.vmem [resolvable:$false] %s931_s20 }
  0x67   : > { %v284_v50 = vmul.f32 %v282_v44, %v280_v36  ;;  %v285_v51 = vmul.f32 %v283_v45, %v281_v37  ;;  %v369_v22 = vstv %s1201_s7  ;;  %v421_v23 = vstv %s1207_s10  ;;  %s933_s7 = scalar_lea.vmem %s932_s20, 384  ;;  %p934_p7 = scmp.lt.s32.totalorder %s584_s4, %s932_s20 }
  0x68   : > { %v344_v52 = vadd.f32 %v716_v46, %v330_v48  ;;  %v345_v53 = vadd.f32 %v717_v47, %v331_v49  ;;  %v393_v25 = vstv %s1205_s18  ;;  %v425_v26 = vstv %s1209_s28  ;;  %p935_p10 = scmp.lt.s32.totalorder %s933_s7, %s927_s5 }
  0x69   : > { %v286_v54 = vmul.f32 0.044715, %v284_v50  ;;  %v287_v55 = vmul.f32 0.044715, %v285_v51  ;;  %v451_v27 = vstv %s1211_s29  ;;  %v455_v31 = vstv %s1213_s27 }
  0x6a   : > { %v346_v56 = vmul.f32 %v344_v52, %v344_v52  ;;  %v347_v57 = vmul.f32 %v345_v53, %v345_v53  ;;  %p936_p12 = por %p935_p10, %p934_p7 }
  0x6b   : > { %v288_v58 = vadd.f32 %v286_v54, %v280_v36  ;;  %v289_v59 = vadd.f32 %v287_v55, %v281_v37 }
  0x6c   : > { %v348_v60 = vmul.f32 %v346_v56, %v344_v52  ;;  %v349_v61 = vmul.f32 %v347_v57, %v345_v53  ;;  %p937_p0 = pnand %p936_p12, %p930_p5 }
  0x6d   : > { %v290_v62 = vmul.f32 0.7978846, %v288_v58  ;;  %v291_v63 = vmul.f32 0.7978846, %v289_v59 }
  0x6e   : > { %v350_v2 = vmul.f32 0.044715, %v348_v60  ;;  %v351_v3 = vmul.f32 0.044715, %v349_v61 }
  0x6f   : > { %829 = vtanh.f32 %v290_v62 }
  0x70   : > { %831 = vtanh.f32 %v291_v63  ;;  %v352_v4 = vadd.f32 %v350_v2, %v344_v52  ;;  %v353_v5 = vadd.f32 %v351_v3, %v345_v53 }
  0x72   : > { %v354_v6 = vmul.f32 0.7978846, %v352_v4  ;;  %v355_v7 = vmul.f32 0.7978846, %v353_v5 }
  0x74   : > { %833 = vtanh.f32 %v354_v6 }
  0x75   : > { %835 = vtanh.f32 %v355_v7 }
  0x7c   : > { %v830_v8 = vpop.eup %829 }
  0x7d   : > { %v832_v9 = vpop.eup %831  ;;  %v294_v10 = vadd.f32 1.0, %v830_v8 }
  0x7e   : > { %v295_v11 = vadd.f32 1.0, %v832_v9 }
  0x7f   : > { %v296_v12 = vmul.f32 0.5, %v294_v10 }
  0x80   : > { %v297_v13 = vmul.f32 0.5, %v295_v11 }
  0x81   : > { %v834_v14 = vpop.eup %833  ;;  %v298_v15 = vmul.f32 %v296_v12, %v280_v36 }
  0x82   : > { %v836_v16 = vpop.eup %835  ;;  %v299_v17 = vmul.f32 %v297_v13, %v281_v37  ;;  %v358_v18 = vadd.f32 1.0, %v834_v14 }
  0x83   : > { %v359_v21 = vadd.f32 1.0, %v836_v16  ;;  %v366_v29 = vmul.f32 %v365_v19, %v298_v15  ;;  %v390_v30 = vmul.f32 %v389_v20, %v298_v15  ;;  %v422_v35 = vmul.f32 %v421_v23, %v298_v15 }
  0x84   : > { %v360_v24 = vmul.f32 0.5, %v358_v18  ;;  %v367_v33 = vmul.f32 %v365_v19, %v299_v17  ;;  %v391_v34 = vmul.f32 %v389_v20, %v299_v17  ;;  %v423_v37 = vmul.f32 %v421_v23, %v299_v17 }
  0x85   : > { %v361_v28 = vmul.f32 0.5, %v359_v21  ;;  %v452_v38 = vmul.f32 %v451_v27, %v298_v15  ;;  %v453_v39 = vmul.f32 %v451_v27, %v299_v17  ;;  %v482_v17 = vlaneseq }
  0x86   : > { %v362_v32 = vmul.f32 %v360_v24, %v344_v52  ;;  %v725_v20 = vrot.slane %v1173_v0, 9  ;;  %v726_v23 = vrot.slane %v1175_v1, 9  ;;  %v731_v27 = vrot.slane %v1173_v0, 10 }
  0x87   : > { %v363_v36 = vmul.f32 %v361_v28, %v345_v53  ;;  %v483_v19 = vshrl.u32 %v482_v17, 7 }
  0x88   : > { %v370_v40 = vmul.f32 %v369_v22, %v362_v32  ;;  %v394_v41 = vmul.f32 %v393_v25, %v362_v32  ;;  %v426_v42 = vmul.f32 %v425_v26, %v362_v32  ;;  %v456_v43 = vmul.f32 %v455_v31, %v362_v32 }
  0x89   : > { %v371_v44 = vmul.f32 %v369_v22, %v363_v36  ;;  %v395_v45 = vmul.f32 %v393_v25, %v363_v36  ;;  %v427_v46 = vmul.f32 %v425_v26, %v363_v36  ;;  %v457_v47 = vmul.f32 %v455_v31, %v363_v36 }
  0x8a   : > { %v372_v48 = vadd.f32 %v370_v40, %v366_v29  ;;  %v396_v49 = vadd.f32 %v394_v41, %v390_v30  ;;  %v428_v50 = vadd.f32 %v426_v42, %v422_v35  ;;  %v458_v53 = vadd.f32 %v456_v43, %v452_v38 }
  0x8b   : > { %v373_v51 = vadd.f32 %v371_v44, %v367_v33  ;;  %v397_v52 = vadd.f32 %v395_v45, %v391_v34  ;;  %v429_v54 = vadd.f32 %v427_v46, %v423_v37  ;;  %v459_v59 = vadd.f32 %v457_v47, %v453_v39 }
  0x8c   : > { %v719_v55 = vmul.f32 -1.442695, %v372_v48  ;;  %v723_v56 = vmul.f32 -1.442695, %v396_v49  ;;  %v729_v60 = vmul.f32 -1.442695, %v428_v50 }
  0x8d   : > { %v720_v57 = vmul.f32 -1.442695, %v373_v51  ;;  %v724_v58 = vmul.f32 -1.442695, %v397_v52  ;;  %v730_v61 = vmul.f32 -1.442695, %v429_v54 }
  0x8e   : > { %837 = vpow2.f32 %v719_v55  ;;  %v735_v62 = vmul.f32 -1.442695, %v458_v53  ;;  %v736_v63 = vmul.f32 -1.442695, %v459_v59  ;;  %v484_v21 = vsub.s32 0, %v483_v19 }
  0x8f   : > { %839 = vpow2.f32 %v720_v57  ;;  %v488_v24 = vsub.s32 4, %v483_v19  ;;  %v732_v30 = vrot.slane %v1175_v1, 10  ;;  %v737_v33 = vrot.slane %v1173_v0, 11 }
  0x90   : > { %841 = vpow2.f32 %v723_v56  ;;  %v738_v34 = vrot.slane %v1175_v1, 11 }
  0x91   : > { %843 = vpow2.f32 %v724_v58 }
  0x92   : > { %845 = vpow2.f32 %v729_v60 }
  0x93   : > { %847 = vpow2.f32 %v730_v61 }
  0x94   : > { %849 = vpow2.f32 %v735_v62 }
  0x95   : > { %851 = vpow2.f32 %v736_v63 }
  0x9b   : > { %v838_v2 = vpop.eup %837 }
  0x9c   : > { %v840_v3 = vpop.eup %839  ;;  %v380_v4 = vadd.f32 1.0, %v838_v2 }
  0x9d   : > { %v842_v5 = vpop.eup %841  ;;  %v381_v6 = vadd.f32 1.0, %v840_v3 }
  0x9e   : > { %v844_v7 = vpop.eup %843  ;;  %853 = vrcp.f32 %v380_v4  ;;  %v404_v8 = vadd.f32 1.0, %v842_v5 }
  0x9f   : > { %v846_v9 = vpop.eup %845  ;;  %855 = vrcp.f32 %v381_v6  ;;  %v405_v10 = vadd.f32 1.0, %v844_v7 }
  0xa0   : > { %v848_v11 = vpop.eup %847  ;;  %857 = vrcp.f32 %v404_v8  ;;  %v436_v12 = vadd.f32 1.0, %v846_v9 }
  0xa1   : > { %v850_v13 = vpop.eup %849  ;;  %859 = vrcp.f32 %v405_v10  ;;  %v437_v14 = vadd.f32 1.0, %v848_v11 }
  0xa2   : > { %v852_v15 = vpop.eup %851  ;;  %861 = vrcp.f32 %v436_v12  ;;  %v466_v16 = vadd.f32 1.0, %v850_v13 }
  0xa3   : > { %863 = vrcp.f32 %v437_v14  ;;  %v467_v18 = vadd.f32 1.0, %v852_v15 }
  0xa4   : > { %865 = vrcp.f32 %v466_v16 }
  0xa5   : > { %867 = vrcp.f32 %v467_v18 }
  0xab   : > { %v854_v22 = vpop.eup %853 }
  0xac   : > { %v856_v25 = vpop.eup %855  ;;  %v386_v26 = vmul.f32 %v854_v22, %v1173_v0 }
  0xad   : > { %v858_v28 = vpop.eup %857  ;;  %v387_v29 = vmul.f32 %v856_v25, %v1175_v1 }
  0xae   : > { %v860_v31 = vpop.eup %859  ;;  %v418_v32 = vmul.f32 %v858_v28, %v725_v20  ;;  %v485_v35 = vrot.slane %v386_v26, %v484_v21  ;;  %v489_v38 = vrot.slane %v386_v26, %v488_v24 }
  0xaf   : > { %v862_v36 = vpop.eup %861  ;;  %v419_v37 = vmul.f32 %v860_v31, %v726_v23  ;;  %v493_v39 = vrot.slane %v387_v29, %v484_v21 }
  0xb0   : > { %v864_v40 = vpop.eup %863  ;;  %v448_v41 = vmul.f32 %v862_v36, %v731_v27  ;;  %v502_v42 = vrot.slane %v418_v32, %v484_v21  ;;  %v506_v43 = vrot.slane %v418_v32, %v488_v24 }
  0xb1   : > { %v866_v44 = vpop.eup %865  ;;  %v449_v45 = vmul.f32 %v864_v40, %v732_v30  ;;  %v510_v46 = vrot.slane %v419_v37, %v484_v21 }
  0xb2   : > { %v868_v0 = vpop.eup %867  ;;  %v478_v47 = vmul.f32 %v866_v44, %v737_v33  ;;  %v519_v1 = vrot.slane %v448_v41, %v484_v21  ;;  %v523_v48 = vrot.slane %v448_v41, %v488_v24  ;;  %v549_v49 = vsel %vm548_vm0, %v485_v35, %v502_v42 }
  0xb3   : > { %v479_v50 = vmul.f32 %v868_v0, %v738_v34  ;;  %v527_v51 = vrot.slane %v449_v45, %v484_v21  ;;  %v550_v52 = vsel %vm548_vm0, %v489_v38, %v506_v43  ;;  %v551_v54 = vsel %vm548_vm0, %v493_v39, %v510_v46 }
  0xb4   : > { %v536_v55 = vrot.slane %v478_v47, %v484_v21  ;;  %v540_v56 = vrot.slane %v478_v47, %v488_v24  ;;  %v553_v53 = vsel %vm552_vm1, %v549_v49, %v519_v1  ;;  %v554_v57 = vsel %vm552_vm1, %v550_v52, %v523_v48 }
  0xb5   : > { %v544_v58 = vrot.slane %v479_v50, %v484_v21  ;;  %v555_v59 = vsel %vm552_vm1, %v551_v54, %v527_v51 }
  0xb6   : > { %v557_v60 = vsel %vm556_vm2, %v553_v53, %v536_v55  ;;  %v558_v61 = vsel %vm556_vm2, %v554_v57, %v540_v56 }
  0xb7   : > { %v559_v62 = vsel %vm556_vm2, %v555_v59, %v544_v58  ;;  %v562_v63 = vcombine.low %v557_v60, %v558_v61 }
  0xb8   : > { %565 = vst [vmem:[%s231_s30 + $0x8] sm:$0xf] %v559_v62 }
  0xb9   : > { %564 = vst [vmem:[%s231_s30] sm:$0xff] %v562_v63 }
  0xba   : > { %940 = shalt.err (!%p937_p0)
}
  0xbb   : > { %s941_s8 = scalar_lea.hbm %s1246_s22, 192  ;;  %s945_s10 = scalar_lea.hbm %s1291_s3, 384 }
  0xbc   : > { %p942_p1 = scmp.ne.s32.totalorder %s1246_s22, %s941_s8  ;;  %p946_p6 = scmp.lt.s32.totalorder %s1246_s22, %s1291_s3 }
  0xbd   : > { %p947_p8 = scmp.lt.s32.totalorder %s945_s10, %s941_s8 }
  0xbe   : > { %p943_p2 = pnand %p942_p1, %p1130_p13 }
  0xbf   : > { %p948_p9 = por %p947_p8, %p946_p6 }
  0xc0   : > { %p944_p4 = pneg %p943_p2 }
  0xc2   : > { %p949_p3 = pnand %p948_p9, %p944_p4 }
  0xc4   : > { %952 = shalt.err (!%p949_p3)
}
  0xc5   : > { %756 = dma.vmem_to_hbm [thread:$0]  (%p1130_p13), %s584_s4, 192, %s1246_s22, %s567_s24  }
  0xc6 PF: > { %s595_s27 = sand.u32 1, %s995_s12   ;;  %p1308_p11 = scmp.ne.s32.totalorder %s1299_s23, 0 }
  0xc7   : > { %p1309_p5 = scmp.ge.s32.totalorder %s1015_s17, 2  ;;  %s596_s25 = scalar_lea.sflag [#allocation4], %s595_s27 }
  0xc9   : > { %p770_p7 = pnand %p1309_p5, %p1308_p11 }
  0xcb   : > { %p771_p10 = pneg %p770_p7 }
  0xcd   : > { %990 = dma.done.wait (%p771_p10), %s596_s25, 192  }
  0xce   : > { %992 = vsyncadd (%p771_p10), %s596_s25, 4294967104  ;;  %s21_s17 = sadd.s32 1, %s1015_s17   ;;  %s1310_s12 = smov %s999_s13 }
  0xcf   : > { %p18_p12 = scmp.ge.s32.totalorder %s21_s17, 4   ;;  %s1311_s13 = smov %s1003_s14 }
  0xd0   : > { %s1312_s14 = smov %s1142_s26  ;;  %s1313_s15 = smov %s1011_s16 }
  0xd1   : > { %s1314_s16 = smov %s1316_s9  ;;  %20 = sbr.rel (!%p18_p12) target bundleno = 8 (0x8), region = 86 }
  0xd6   :  { %601 = vsyncpa [#allocation3], 1 }
  0xd7   :  { %603 = vsyncpa [#allocation3 + $0x1], 1 }
  0xd8   :  { %604 = vsyncpa [#allocation4], 1 }
  0xd9   :  { %606 = vsyncpa [#allocation4 + $0x1], 1 }
  0xda   :  { %607 = vsyncpa [#allocation5], 1 }
  0xdb   :  { %609 = vsyncpa [#allocation5 + $0x1], 1 }
  0xdc   :  { %610 = vsyncpa [#allocation8], 1 }

</bundles_post_ra>
